<compile_context>
chip_gen: v5e
topology: v5e:2x2
jax: 0.10.0
libtpu: 0.0.40
codegen_flags: <defaults>
</compile_context>

<pallas_src>
import functools

import jax
import jax.numpy as jnp
from jax.experimental import pallas as pl
from jax.experimental.pallas import tpu as pltpu

# ---------------- model dims (MLP autoencoder, small demo sizes) ----------------
BATCH = 2
D_IN = 64        # flattened input features
HIDDEN = 32
LATENT = 8

F_PAD = 128              # lane-padded feature width (TPU lane count)
DEFAULT_TILE_B = 1024    # batch rows per grid step for large batches


# ------------------------------- kernels ---------------------------------------
def ae_forward_kernel(x_ref, w_ref, b_ref, out_ref):
    """Fused AE forward for one batch tile.

    x_ref  : (TB, 128)    bf16  (lanes 64..127 zero-padded)
    w_ref  : (4, 128, 128) bf16  rows: [w1, w2, w3, w4], zero-padded
    b_ref  : (8, 128)     f32   rows 0..3: [b1, b2, b3, b4], zero-padded
    out_ref: (TB, 128)    f32   packed [recon(64) | act(32) | 32 pad]
    """
    bf16, f32 = jnp.bfloat16, jnp.float32
    x = x_ref[...]                                                     # bf16 (TB,128)

    # ----- encoder (bf16 MXU inputs, f32 accumulate, f32 elementwise) -----
    h = jnp.dot(x, w_ref[0], preferred_element_type=f32) + b_ref[0:1, :]
    h = jnp.maximum(h, 0.0)                                            # cols 0..31 valid
    z = jnp.dot(h.astype(bf16), w_ref[1],
                preferred_element_type=f32) + b_ref[1:2, :]            # cols 0..7 valid

    # ----- decoder -----
    d = jnp.dot(z.astype(bf16), w_ref[2],
                preferred_element_type=f32) + b_ref[2:3, :]
    d = jnp.maximum(d, 0.0)
    r = jnp.dot(d.astype(bf16), w_ref[3],
                preferred_element_type=f32) + b_ref[3:4, :]
    r = jax.nn.sigmoid(r)                                              # cols 0..63 valid

    # Single packed, lane-dense, unmasked (TB,128) store:
    #   lanes 0..63  = reconstructed, lanes 64..95 = encoder activations,
    #   lanes 96..127 = zeros (h's padded cols).  Lane shuffle is XLU work,
    # which has full slack in this write-bound kernel.
    out_ref[...] = jnp.concatenate([r[:, :64], h[:, :64]], axis=-1)


def ae_encode_kernel(x_ref, w_ref, b_ref, out_ref):
    """Encoder-only path (Network.encode parity): packed [z(8)|..pad..|act(32)]."""
    bf16, f32 = jnp.bfloat16, jnp.float32
    x = x_ref[...]
    h = jnp.dot(x, w_ref[0], preferred_element_type=f32) + b_ref[0:1, :]
    h = jnp.maximum(h, 0.0)
    z = jnp.dot(h.astype(bf16), w_ref[1],
                preferred_element_type=f32) + b_ref[1:2, :]
    # lanes 0..7 = z (8..63 zeros), lanes 64..95 = activations
    out_ref[...] = jnp.concatenate([z[:, :64], h[:, :64]], axis=-1)


# ----------------------------- host helpers ------------------------------------
def _round_up(n, m):
    return ((n + m - 1) // m) * m


def _cdiv(a, b):
    return (a + b - 1) // b


def _choose_tiling(B, tile_b):
    """Pick (tb, b_pad, n_tiles): tb is a multiple of 8 sublanes, b_pad stays
    close to B (no near-2x padding blowup), and for B>=16 we keep >=2 grid
    steps so v7x's two TensorCores both get work."""
    n_tiles = _cdiv(B, tile_b)
    if B >= 16:
        n_tiles = max(n_tiles, 2)
    tb = min(tile_b, _round_up(_cdiv(B, n_tiles), 8))
    b_pad = _round_up(B, tb)
    return tb, b_pad, b_pad // tb


def prepare_params(params):
    """One-time layout prep (hoisted out of the per-call path per perf review):
    zero-pad + bf16-cast weights into one (4,128,128) block, stack the four
    biases into one (8,128) f32 block."""
    (w1, b1, w2, b2, w3, b3, w4, b4) = params

    def padw(w):
        out = jnp.zeros((F_PAD, F_PAD), jnp.bfloat16)
        return out.at[:w.shape[0], :w.shape[1]].set(w.astype(jnp.bfloat16))

    wp = jnp.stack([padw(w1), padw(w2), padw(w3), padw(w4)])        # (4,128,128) bf16
    bp = jnp.zeros((8, F_PAD), jnp.float32)
    for i, b in enumerate((b1, b2, b3, b4)):
        bp = bp.at[i, :b.shape[-1]].set(b.reshape(-1))              # biases stay f32
    return wp, bp


def _make_call(kernel, b_pad, tb, n_tiles, wp, bp):
    flops = 2 * b_pad * 4 * F_PAD * F_PAD
    bytes_accessed = (b_pad * F_PAD * 2          # bf16 x stream
                      + wp.size * 2              # bf16 weights (read once)
                      + bp.size * 4              # f32 biases
                      + b_pad * F_PAD * 4)       # single packed f32 output
    cost = pl.CostEstimate(flops=flops,
                           transcendentals=b_pad * F_PAD,
                           bytes_accessed=bytes_accessed)
    return pl.pallas_call(
        kernel,
        out_shape=jax.ShapeDtypeStruct((b_pad, F_PAD), jnp.float32),
        grid=(n_tiles,),
        in_specs=[
            pl.BlockSpec((tb, F_PAD), lambda i: (i, 0)),             # x: batch-tiled
            pl.BlockSpec((4, F_PAD, F_PAD), lambda i: (0, 0, 0)),    # weights: pinned
            pl.BlockSpec((8, F_PAD), lambda i: (0, 0)),              # biases: pinned
        ],
        out_specs=pl.BlockSpec((tb, F_PAD), lambda i: (i, 0)),       # packed output
        compiler_params=pltpu.CompilerParams(
            dimension_semantics=("parallel",)),                       # v7x: 2 TCs
        cost_estimate=cost,
    )


def _pad_x(x, b_pad):
    B = x.shape[0]
    return jnp.zeros((b_pad, F_PAD), jnp.bfloat16).at[:B, :D_IN].set(
        x.astype(jnp.bfloat16))


@functools.partial(jax.jit, static_argnames=("tile_b",))
def ae_forward(x, packed_params, tile_b=DEFAULT_TILE_B):
    """Network.forward: returns (reconstructed, activations)."""
    wp, bp = packed_params
    B = x.shape[0]
    tb, b_pad, n_tiles = _choose_tiling(B, tile_b)
    out = _make_call(ae_forward_kernel, b_pad, tb, n_tiles, wp, bp)(
        _pad_x(x, b_pad), wp, bp)
    # unpack: [recon(64) | act(32) | pad]
    return out[:B, :D_IN], out[:B, D_IN:D_IN + HIDDEN]


@functools.partial(jax.jit, static_argnames=("tile_b",))
def ae_encode(x, packed_params, tile_b=DEFAULT_TILE_B):
    """Network.encode: returns (z, activations).  Kept off the forward hot path."""
    wp, bp = packed_params
    B = x.shape[0]
    tb, b_pad, n_tiles = _choose_tiling(B, tile_b)
    out = _make_call(ae_encode_kernel, b_pad, tb, n_tiles, wp, bp)(
        _pad_x(x, b_pad), wp, bp)
    # unpack: [z(8) | zeros | act(32) @ lane 64]
    return out[:B, :LATENT], out[:B, 64:64 + HIDDEN]


# ------------------------------ init / reference -------------------------------
def init_params(key):
    """Deterministic parameter init (He-style scaling), feature-last layout."""
    ks = jax.random.split(key, 8)

    def lin(kw, kb, d_in, d_out):
        w = jax.random.normal(kw, (d_in, d_out), jnp.float32) * (2.0 / d_in) ** 0.5
        b = jax.random.normal(kb, (1, d_out), jnp.float32) * 0.01
        return w, b

    w1, b1 = lin(ks[0], ks[1], D_IN, HIDDEN)
    w2, b2 = lin(ks[2], ks[3], HIDDEN, LATENT)
    w3, b3 = lin(ks[4], ks[5], LATENT, HIDDEN)
    w4, b4 = lin(ks[6], ks[7], HIDDEN, D_IN)
    return (w1, b1, w2, b2, w3, b3, w4, b4)


def _reference(x, params):
    """Pure-JAX reference mirroring the kernel precision policy
    (bf16 matmul inputs, f32 accumulation, f32 elementwise)."""
    (w1, b1, w2, b2, w3, b3, w4, b4) = params
    bf16, f32 = jnp.bfloat16, jnp.float32
    xb = x.astype(bf16)
    h = jnp.maximum(jnp.dot(xb, w1.astype(bf16), preferred_element_type=f32) + b1, 0.0)
    z = jnp.dot(h.astype(bf16), w2.astype(bf16), preferred_element_type=f32) + b2
    d = jnp.maximum(jnp.dot(z.astype(bf16), w3.astype(bf16),
                            preferred_element_type=f32) + b3, 0.0)
    r = jax.nn.sigmoid(jnp.dot(d.astype(bf16), w4.astype(bf16),
                               preferred_element_type=f32) + b4)
    return r, h, z


if __name__ == "__main__":
    key = jax.random.PRNGKey(0)
    k_x, k_p = jax.random.split(key)

    x = jax.random.normal(k_x, (BATCH, D_IN), jnp.float32)
    params = init_params(k_p)
    packed = prepare_params(params)      # one-time pad/cast, outside the hot path

    recon, act = jax.block_until_ready(ae_forward(x, packed))
    z, act_e = jax.block_until_ready(ae_encode(x, packed))

    r_exp, h_exp, z_exp = _reference(x, params)
    assert recon.shape == (BATCH, D_IN)
    assert act.shape == (BATCH, HIDDEN)
    assert z.shape == (BATCH, LATENT)
    # bf16-input / f32-accumulate semantics on both sides; tolerance covers
    # MXU vs XLA accumulation-order differences.
    assert jnp.allclose(recon, r_exp, atol=1e-2, rtol=1e-2)
    assert jnp.allclose(act, h_exp, atol=1e-2, rtol=1e-2)
    assert jnp.allclose(act_e, h_exp, atol=1e-2, rtol=1e-2)
    assert jnp.allclose(z, z_exp, atol=1e-2, rtol=1e-2)

    print("KERNEL_OK")
</pallas_src>

<mosaic_0001>
module attributes {stable_mosaic.version = 11 : i64} {
  func.func @ae_forward_kernel(%arg0: i32, %arg1: memref<8x128xbf16, #tpu.memory_space<vmem>>, %arg2: memref<4x128x128xbf16, #tpu.memory_space<vmem>>, %arg3: memref<8x128xf32, #tpu.memory_space<vmem>>, %arg4: memref<8x128xf32, #tpu.memory_space<vmem>>) attributes {dimension_semantics = [#tpu.dimension_semantics<parallel>], iteration_bounds = array<i64: 1>, scalar_prefetch = 0 : i64, scratch_operands = 0 : i64, tpu.core_type = #tpu.core_type<tc>, window_params = [{transform_indices = @transform_0, window_bounds = array<i64: 8, 128>}, {pipeline_mode = #tpu.pipeline_mode<synchronous>, transform_indices = @transform_1, window_bounds = array<i64: 4, 128, 128>}, {pipeline_mode = #tpu.pipeline_mode<synchronous>, transform_indices = @transform_2, window_bounds = array<i64: 8, 128>}, {transform_indices = @transform_3, window_bounds = array<i64: 8, 128>}]} {
    %c0 = arith.constant 0 : index
    %c0_0 = arith.constant 0 : index
    %0 = vector.load %arg1[%c0, %c0_0] : memref<8x128xbf16, #tpu.memory_space<vmem>>, vector<8x128xbf16>
    %c0_1 = arith.constant 0 : index
    %c0_2 = arith.constant 0 : index
    %c0_3 = arith.constant 0 : index
    %1 = vector.load %arg2[%c0_1, %c0_2, %c0_3] : memref<4x128x128xbf16, #tpu.memory_space<vmem>>, vector<1x128x128xbf16>
    %2 = vector.shape_cast %1 : vector<1x128x128xbf16> to vector<128x128xbf16>
    %cst = arith.constant dense<0.000000e+00> : vector<8x128xf32>
    %3 = tpu.matmul %0, %2, %cst {dimension_numbers = #tpu.dot_dimension_numbers<[1], [0], [0], [1], [0, 0, 1, 1], [], []>} : vector<8x128xbf16>, vector<128x128xbf16>, vector<8x128xf32> -> vector<8x128xf32>
    %c0_4 = arith.constant 0 : index
    %c0_5 = arith.constant 0 : index
    %4 = vector.load %arg3[%c0_4, %c0_5] : memref<8x128xf32, #tpu.memory_space<vmem>>, vector<1x128xf32>
    %5 = vector.broadcast %4 : vector<1x128xf32> to vector<8x128xf32>
    %6 = arith.addf %3, %5 : vector<8x128xf32>
    %cst_6 = arith.constant 0.000000e+00 : f32
    %7 = vector.broadcast %cst_6 : f32 to vector<8x128xf32>
    %8 = arith.maximumf %6, %7 : vector<8x128xf32>
    %9 = arith.truncf %8 : vector<8x128xf32> to vector<8x128xbf16>
    %c1 = arith.constant 1 : index
    %c0_7 = arith.constant 0 : index
    %c0_8 = arith.constant 0 : index
    %10 = vector.load %arg2[%c1, %c0_7, %c0_8] : memref<4x128x128xbf16, #tpu.memory_space<vmem>>, vector<1x128x128xbf16>
    %11 = vector.shape_cast %10 : vector<1x128x128xbf16> to vector<128x128xbf16>
    %cst_9 = arith.constant dense<0.000000e+00> : vector<8x128xf32>
    %12 = tpu.matmul %9, %11, %cst_9 {dimension_numbers = #tpu.dot_dimension_numbers<[1], [0], [0], [1], [0, 0, 1, 1], [], []>} : vector<8x128xbf16>, vector<128x128xbf16>, vector<8x128xf32> -> vector<8x128xf32>
    %c1_10 = arith.constant 1 : index
    %c0_11 = arith.constant 0 : index
    %13 = vector.load %arg3[%c1_10, %c0_11] : memref<8x128xf32, #tpu.memory_space<vmem>>, vector<1x128xf32>
    %14 = vector.broadcast %13 : vector<1x128xf32> to vector<8x128xf32>
    %15 = arith.addf %12, %14 : vector<8x128xf32>
    %16 = arith.truncf %15 : vector<8x128xf32> to vector<8x128xbf16>
    %c2 = arith.constant 2 : index
    %c0_12 = arith.constant 0 : index
    %c0_13 = arith.constant 0 : index
    %17 = vector.load %arg2[%c2, %c0_12, %c0_13] : memref<4x128x128xbf16, #tpu.memory_space<vmem>>, vector<1x128x128xbf16>
    %18 = vector.shape_cast %17 : vector<1x128x128xbf16> to vector<128x128xbf16>
    %cst_14 = arith.constant dense<0.000000e+00> : vector<8x128xf32>
    %19 = tpu.matmul %16, %18, %cst_14 {dimension_numbers = #tpu.dot_dimension_numbers<[1], [0], [0], [1], [0, 0, 1, 1], [], []>} : vector<8x128xbf16>, vector<128x128xbf16>, vector<8x128xf32> -> vector<8x128xf32>
    %c2_15 = arith.constant 2 : index
    %c0_16 = arith.constant 0 : index
    %20 = vector.load %arg3[%c2_15, %c0_16] : memref<8x128xf32, #tpu.memory_space<vmem>>, vector<1x128xf32>
    %21 = vector.broadcast %20 : vector<1x128xf32> to vector<8x128xf32>
    %22 = arith.addf %19, %21 : vector<8x128xf32>
    %cst_17 = arith.constant 0.000000e+00 : f32
    %23 = vector.broadcast %cst_17 : f32 to vector<8x128xf32>
    %24 = arith.maximumf %22, %23 : vector<8x128xf32>
    %25 = arith.truncf %24 : vector<8x128xf32> to vector<8x128xbf16>
    %c3 = arith.constant 3 : index
    %c0_18 = arith.constant 0 : index
    %c0_19 = arith.constant 0 : index
    %26 = vector.load %arg2[%c3, %c0_18, %c0_19] : memref<4x128x128xbf16, #tpu.memory_space<vmem>>, vector<1x128x128xbf16>
    %27 = vector.shape_cast %26 : vector<1x128x128xbf16> to vector<128x128xbf16>
    %cst_20 = arith.constant dense<0.000000e+00> : vector<8x128xf32>
    %28 = tpu.matmul %25, %27, %cst_20 {dimension_numbers = #tpu.dot_dimension_numbers<[1], [0], [0], [1], [0, 0, 1, 1], [], []>} : vector<8x128xbf16>, vector<128x128xbf16>, vector<8x128xf32> -> vector<8x128xf32>
    %c3_21 = arith.constant 3 : index
    %c0_22 = arith.constant 0 : index
    %29 = vector.load %arg3[%c3_21, %c0_22] : memref<8x128xf32, #tpu.memory_space<vmem>>, vector<1x128xf32>
    %30 = vector.broadcast %29 : vector<1x128xf32> to vector<8x128xf32>
    %31 = arith.addf %28, %30 : vector<8x128xf32>
    %32 = arith.negf %31 : vector<8x128xf32>
    %33 = math.exp %32 : vector<8x128xf32>
    %cst_23 = arith.constant 1.000000e+00 : f32
    %34 = vector.broadcast %cst_23 : f32 to vector<8x128xf32>
    %35 = arith.addf %34, %33 : vector<8x128xf32>
    %36 = arith.divf %34, %35 : vector<8x128xf32>
    %37 = vector.extract_strided_slice %36 {offsets = [0, 0], sizes = [8, 64], strides = [1, 1]} : vector<8x128xf32> to vector<8x64xf32>
    %38 = vector.extract_strided_slice %8 {offsets = [0, 0], sizes = [8, 64], strides = [1, 1]} : vector<8x128xf32> to vector<8x64xf32>
    %39 = tpu.concatenate %37, %38 in 1 : vector<8x64xf32>, vector<8x64xf32> -> vector<8x128xf32>
    %c0_24 = arith.constant 0 : index
    %c0_25 = arith.constant 0 : index
    %40 = vector.load %arg4[%c0_24, %c0_25] : memref<8x128xf32, #tpu.memory_space<vmem>>, vector<8x128xf32>
    tpu.vector_store %arg4[%c0_24, %c0_25], %39 {strides = array<i32>} : memref<8x128xf32, #tpu.memory_space<vmem>>, vector<8x128xf32>,
    return
  }
  func.func @transform_0(%arg0: i32) -> (i32, i32) {
    %c0_i32 = arith.constant 0 : i32
    %c0_i32_0 = arith.constant 0 : i32
    return %arg0, %c0_i32 : i32, i32
  }
  func.func @transform_1(%arg0: i32) -> (i32, i32, i32) {
    %c0_i32 = arith.constant 0 : i32
    %c0_i32_0 = arith.constant 0 : i32
    %c0_i32_1 = arith.constant 0 : i32
    %c0_i32_2 = arith.constant 0 : i32
    return %c0_i32, %c0_i32_0, %c0_i32_1 : i32, i32, i32
  }
  func.func @transform_2(%arg0: i32) -> (i32, i32) {
    %c0_i32 = arith.constant 0 : i32
    %c0_i32_0 = arith.constant 0 : i32
    %c0_i32_1 = arith.constant 0 : i32
    return %c0_i32, %c0_i32_0 : i32, i32
  }
  func.func @transform_3(%arg0: i32) -> (i32, i32) {
    %c0_i32 = arith.constant 0 : i32
    %c0_i32_0 = arith.constant 0 : i32
    return %arg0, %c0_i32 : i32, i32
  }
}

</mosaic_0001>

<bundles_post_ra>
// kernel: ae_forward.1
= control target key start
LH: loop header
LB: loop body
LE: loop exit
PB: predicated region body
PF: predicated region fallthrough
CT: control target
= control target key end

     0   :  { %8 = vsyncpa [#allocation3], 0  ;;  %s584_s15 = smov [#allocation2]   ;;  %s585_s17 = smov 64   ;;  %s631_s0 = inlined_call_operand.vmem [shape: bf16[8,128], index: 0, kind: input, shape index: {}]   ;;  %s632_s1 = inlined_call_operand.hbm [shape: bf16[4,128,128], index: 1, kind: input, shape index: {}]   ;;  %s633_s2 = inlined_call_operand.vmem [shape: f32[8,128], index: 2, kind: input, shape index: {}]   ;;  %s634_s3 = inlined_call_operand.vmem [shape: f32[8,128], index: 3, kind: output, shape index: {}]  }
   0x1   :  { %s15_s14 = sshll.u32 %s632_s1, 4  ;;  %s17_s16 = sshll.u32 %s584_s15, 4  ;;  %s16_s14 = int_to_ptr.hbm [resolvable:$true] %s15_s14  ;;  %s18_s16 = int_to_ptr.vmem [resolvable:$true] %s17_s16 }
   0x2   :  { %s586_s18 = smov 4  }
   0x3   :  { %23 = dma.hbm_to_vmem [thread:$0]  %s16_s14, 4096, %s18_s16, [#allocation3], %s585_s17, %s585_s17, %s586_s18  }
   0x4   :  { %582 = dma.done.wait [#allocation3], 4096  }
   0x5   :  { %583 = vsyncadd [#allocation3], 4294963200  ;;  %v522_v0 = vld [vmem:[#allocation2 + $0x38] sm:$0xff]  ;;  %v521_v1 = vld [vmem:[#allocation2 + $0x30] sm:$0xff]  ;;  %vm378_vm3 = vcmask 523264  }
   0x6   :  { %97 = vmatpush.bf16.msra.mxu0 %v522_v0  ;;  %v530_v2 = vld [vmem:[#allocation2 + $0x78] sm:$0xff]  ;;  %v529_v3 = vld [vmem:[#allocation2 + $0x70] sm:$0xff]  ;;  %v520_v4 = vld [vmem:[#allocation2 + $0x28] sm:$0xff] }
   0x7   :  { %179 = vmatpush.bf16.msra.mxu1 %v530_v2  ;;  %v528_v5 = vld [vmem:[#allocation2 + $0x68] sm:$0xff]  ;;  %v519_v6 = vld [vmem:[#allocation2 + $0x20] sm:$0xff]  ;;  %v518_v8 = vld [vmem:[#allocation2 + $0x18] sm:$0xff] }
   0x8   :  { %v527_v7 = vld [vmem:[#allocation2 + $0x60] sm:$0xff]  ;;  %v526_v9 = vld [vmem:[#allocation2 + $0x58] sm:$0xff]  ;;  %v517_v10 = vld [vmem:[#allocation2 + $0x10] sm:$0xff] }
   0x9   :  { %v525_v11 = vld [vmem:[#allocation2 + $0x50] sm:$0xff]  ;;  %v516_v12 = vld [vmem:[#allocation2 + $0x8] sm:$0xff]  ;;  %v515_v13 = vld [vmem:[#allocation2] sm:$0xff] }
   0xa   :  { %98 = vmatpush.bf16.msra.mxu0 %v521_v1  ;;  %v30_v14 = vld [vmem:[%s631_s0] sm:$0xf]  ;;  %v524_v15 = vld [vmem:[#allocation2 + $0x48] sm:$0xff]  ;;  %v538_v17 = vld [vmem:[#allocation2 + $0xb8] sm:$0xff] }
   0xb   :  { %180 = vmatpush.bf16.msra.mxu1 %v529_v3  ;;  %v523_v16 = vld [vmem:[#allocation2 + $0x40] sm:$0xff]  ;;  %260 = vmatpush.bf16.msra.mxu2 %v538_v17  ;;  %v537_v18 = vld [vmem:[#allocation2 + $0xb0] sm:$0xff]  ;;  %v536_v19 = vld [vmem:[#allocation2 + $0xa8] sm:$0xff] }
   0xc   :  { %v535_v20 = vld [vmem:[#allocation2 + $0xa0] sm:$0xff]  ;;  %v534_v27 = vld [vmem:[#allocation2 + $0x98] sm:$0xff]  ;;  %v533_v28 = vld [vmem:[#allocation2 + $0x90] sm:$0xff] }
   0xd   :  { %v550_v21 = vld [vmem:[%s633_s2] ss:$0 sm:$0xff]  ;;  %v532_v29 = vld [vmem:[#allocation2 + $0x88] sm:$0xff]  ;;  %v546_v31 = vld [vmem:[#allocation2 + $0xf8] sm:$0xff] }
   0xe   :  { %99 = vmatpush.bf16.msra.mxu0 %v520_v4  ;;  %v531_v30 = vld [vmem:[#allocation2 + $0x80] sm:$0xff]  ;;  %342 = vmatpush.bf16.msra.mxu3 %v546_v31  ;;  %v545_v32 = vld [vmem:[#allocation2 + $0xf0] sm:$0xff]  ;;  %v544_v33 = vld [vmem:[#allocation2 + $0xe8] sm:$0xff] }
   0xf   :  { %181 = vmatpush.bf16.msra.mxu1 %v528_v5  ;;  %261 = vmatpush.bf16.msra.mxu2 %v537_v18  ;;  %v543_v34 = vld [vmem:[#allocation2 + $0xe0] sm:$0xff]  ;;  %v542_v35 = vld [vmem:[#allocation2 + $0xd8] sm:$0xff]  ;;  %v541_v36 = vld [vmem:[#allocation2 + $0xd0] sm:$0xff] }
  0x10   :  { %v551_v37 = vld [vmem:[%s633_s2 + $0x1] ss:$0 sm:$0xff]  ;;  %v540_v42 = vld [vmem:[#allocation2 + $0xc8] sm:$0xff]  ;;  %v552_v44 = vld [vmem:[%s633_s2 + $0x2] ss:$0 sm:$0xff] }
  0x11   :  { %v539_v43 = vld [vmem:[#allocation2 + $0xc0] sm:$0xff] }
  0x12   :  { %100 = vmatpush.bf16.msra.mxu0 %v519_v6  ;;  %343 = vmatpush.bf16.msra.mxu3 %v545_v32  ;;  %v553_v50 = vld [vmem:[%s633_s2 + $0x3] ss:$0 sm:$0xff] }
  0x13   :  { %182 = vmatpush.bf16.msra.mxu1 %v527_v7  ;;  %262 = vmatpush.bf16.msra.mxu2 %v536_v19 }
  0x16   :  { %101 = vmatpush.bf16.msra.mxu0 %v518_v8  ;;  %344 = vmatpush.bf16.msra.mxu3 %v544_v33 }
  0x17   :  { %183 = vmatpush.bf16.msra.mxu1 %v526_v9  ;;  %263 = vmatpush.bf16.msra.mxu2 %v535_v20 }
  0x1a   :  { %102 = vmatpush.bf16.msra.mxu0 %v517_v10  ;;  %345 = vmatpush.bf16.msra.mxu3 %v543_v34 }
  0x1b   :  { %184 = vmatpush.bf16.msra.mxu1 %v525_v11  ;;  %264 = vmatpush.bf16.msra.mxu2 %v534_v27 }
  0x1e   :  { %103 = vmatpush.bf16.msra.mxu0 %v516_v12  ;;  %346 = vmatpush.bf16.msra.mxu3 %v542_v35 }
  0x1f   :  { %185 = vmatpush.bf16.msra.mxu1 %v524_v15  ;;  %265 = vmatpush.bf16.msra.mxu2 %v533_v28 }
  0x22   :  { %104 = vmatpush.bf16.msra.mxu0 %v515_v13  ;;  %347 = vmatpush.bf16.msra.mxu3 %v541_v36 }
  0x23   :  { %186 = vmatpush.bf16.msra.mxu1 %v523_v16  ;;  %266 = vmatpush.bf16.msra.mxu2 %v532_v29 }
  0x25   :  { %105 = vmatmul.bf16.vlgmr.msra.gmra.mxu0 %v30_v14 }
  0x26   :  { %348 = vmatpush.bf16.msra.mxu3 %v540_v42 }
  0x27   :  { %267 = vmatpush.bf16.msra.mxu2 %v531_v30 }
  0x2a   :  { %349 = vmatpush.bf16.msra.mxu3 %v539_v43 }
  0xa2   :  { %v106_v22 = vpop.f32.mrf.mxu0 }
  0xa3   :  { %v107_v23 = vadd.f32 %v550_v21, %v106_v22 }
  0xa5   :  { %v110_v24 = vmax.f32 %v107_v23, 0.0 }
  0xa7   :  { %375 = vrot.lane.b32.xlu0 %v110_v24, %s585_s17  ;;  %v111_v25 = vpack.c.bf16 %v110_v24, %v110_v24 }
  0xa9   :  { %187 = vmatmul.bf16.vlgmr.msra.gmra.mxu1 %v111_v25 }
  0xaa   :  { %v108_v26 = vpop.f32.mrf.mxu0 }
 0x119   :  { %v376_v2 = vpop.permute.xlu0 %375 }
 0x126   :  { %v188_v38 = vpop.f32.mrf.mxu1 }
 0x127   :  { %v189_v39 = vadd.f32 %v551_v37, %v188_v38 }
 0x129   :  { %v192_v40 = vpack.c.bf16 %v189_v39, %v189_v39 }
 0x12b   :  { %268 = vmatmul.bf16.vlgmr.msra.gmra.mxu2 %v192_v40 }
 0x12e   :  { %v190_v41 = vpop.f32.mrf.mxu1 }
 0x1ae   :  { %v269_v45 = vpop.f32.mrf.mxu2 }
 0x1af   :  { %v270_v46 = vadd.f32 %v552_v44, %v269_v45 }
 0x1b1   :  { %v273_v47 = vmax.f32 %v270_v46, 0.0 }
 0x1b3   :  { %v274_v48 = vpack.c.bf16 %v273_v47, %v273_v47 }
 0x1b5   :  { %350 = vmatmul.bf16.vlgmr.msra.gmra.mxu3 %v274_v48 }
 0x1b6   :  { %v271_v49 = vpop.f32.mrf.mxu2 }
 0x238   :  { %v351_v51 = vpop.f32.mrf.mxu3 }
 0x239   :  { %v352_v52 = vadd.f32 %v553_v50, %v351_v51 }
 0x23b   :  { %v514_v53 = vmul.f32 -1.442695, %v352_v52 }
 0x23d   :  { %554 = vpow2.f32 %v514_v53 }
 0x240   :  { %v353_v54 = vpop.f32.mrf.mxu3 }
 0x243   :  { %v555_v55 = vpop.eup %554 }
 0x244   :  { %v358_v56 = vadd.f32 1.0, %v555_v55 }
 0x246   :  { %556 = vrcp.f32 %v358_v56  ;;  %v370_v60 = vand.u32 2147483648, %v358_v56  ;;  %v368_v62 = vand.u32 2147483647, %v358_v56  ;;  %vm364_vm1 = vweird.f32 %v358_v56 }
 0x248   :  { %v371_v0 = vor.u32 1.1754944e-38, %v370_v60  ;;  %vm369_vm4 = vcmp.eq.f32.partialorder %v368_v62, 8.507059e+37 }
 0x24c   :  { %v557_v57 = vpop.eup %556 }
 0x24d   :  { %v360_v58 = vmul.f32 %v557_v57, %v358_v56  ;;  %vm365_vm0 = vweird.f32 %v557_v57 }
 0x24e   :  { %vm366_vm2 = vmor %vm364_vm1, %vm365_vm0 }
 0x24f   :  { %v361_v59 = vsub.f32 1.0, %v360_v58 }
 0x251   :  { %v362_v61 = vmul.f32 %v557_v57, %v361_v59 }
 0x253   :  { %v363_v63 = vadd.f32 %v557_v57, %v362_v61 }
 0x255   :  { %v367_v1 = vsel %vm366_vm2, %v557_v57, %v363_v63 }
 0x256   :  { %v372_v3 = vsel %vm369_vm4, %v371_v0, %v367_v1 }
 0x257   :  { %v379_v4 = vsel %vm378_vm3, %v372_v3, %v376_v2 }
 0x258   :  { %380 = vst [vmem:[%s634_s3] sm:$0xff] %v379_v4 }
 0x259   :  { %385 = vsyncpa [#allocation3], 1 }

</bundles_post_ra>
